<compile_context>
chip_gen: v6e
topology: v6e:2x2x1
jax: 0.10.0
libtpu: 0.0.40
codegen_flags: <defaults>
</compile_context>

<pallas_src>
import functools

import jax
import jax.numpy as jnp
from jax.experimental import pallas as pl
from jax.experimental.pallas import tpu as pltpu

_LANE = 128


def _round_up(n, m):
    return (n + m - 1) // m * m


def predictor_kernel(x_ref, w1_ref, gb_ref, w2_ref, o_ref):
    # x_ref: (B, L)   w1_ref: (L, Hp)   gb_ref: (2, Hp)   w2_ref: (Hp, L)   o_ref: (B, L)

    # ---- fc1 on the MXU (bias cancelled by training-mode BN) ----
    x = x_ref[...]
    h = jnp.dot(x, w1_ref[...], preferred_element_type=jnp.float32)      # (B, Hp)

    # ---- BatchNorm1d, training-mode batch statistics (one-pass), folded affine ----
    mean = jnp.mean(h, axis=0, keepdims=True)                            # (1, Hp)
    mean_sq = jnp.mean(h * h, axis=0, keepdims=True)                     # (1, Hp)
    var = jnp.maximum(mean_sq - mean * mean, 0.0)                        # biased var
    gb = gb_ref[...]                                                     # (2, Hp)
    scale = gb[0:1] * jax.lax.rsqrt(var + 1e-5)                          # gamma * inv_std
    shift = gb[1:2] - mean * scale                                       # beta - mean*scale
    h = h * scale + shift
    # Padded lane H: pre-BN activation is 0 for every row (zero w1 column, no bias),
    # gamma=0, beta=1  =>  the lane is the constant 1 after BN and after LeakyReLU,
    # so the fc2 matmul picks up b2 from row H of w2 (bias folded into the matmul).

    # ---- LeakyReLU(0.2): single VALU max ----
    h = jnp.maximum(h, 0.2 * h)

    # ---- fc2 (bias folded into w2) ----
    o_ref[...] = jnp.dot(h, w2_ref[...], preferred_element_type=jnp.float32)


def prepare_params(w1, b1, gamma, beta, w2, b2):
    """One-time setup (call outside the hot path).

    Pads the hidden dim to a lane multiple with one spare lane reserved for the
    folded fc2 bias, stacks gamma/beta, and drops b1 (a mathematical no-op
    under training-mode BatchNorm, which subtracts the batch mean).
    """
    del b1  # cancelled by BN batch-mean subtraction (training mode only)
    L, H = w1.shape
    Hp = _round_up(H + 1, _LANE)  # >= H+1: reserve one lane for the bias trick

    w1_p = jnp.zeros((L, Hp), jnp.float32).at[:, :H].set(w1.astype(jnp.float32))

    gb_p = jnp.zeros((2, Hp), jnp.float32)
    gb_p = gb_p.at[0, :H].set(jnp.asarray(gamma, jnp.float32).reshape(-1))
    gb_p = gb_p.at[1, :H].set(jnp.asarray(beta, jnp.float32).reshape(-1))
    gb_p = gb_p.at[1, H].set(1.0)  # constant-1 lane (gamma stays 0 there)

    w2_p = jnp.zeros((Hp, L), jnp.float32).at[:H, :].set(w2.astype(jnp.float32))
    w2_p = w2_p.at[H, :].set(jnp.asarray(b2, jnp.float32).reshape(-1))
    return w1_p, gb_p, w2_p


def _vmem_budget(B, L, Hp):
    f32 = 4
    io_blocks = 2 * (2 * B * L) * f32                 # double-buffered x and out blocks
    weights = (L * Hp + 8 * Hp + Hp * L) * f32        # w1 + gb (sublane-padded) + w2
    interm = 4 * B * Hp * f32                         # h + elementwise temporaries
    total = io_blocks + weights + interm
    # Floor for compiler-internal scratch; cap well under v7x's 64 MiB physical VMEM.
    return int(min(max(2 * total, 4 << 20), 56 << 20))


@jax.jit
def predictor_forward(x, w1_p, gb_p, w2_p):
    """x: (B, L) or (G, B, L).  BatchNorm statistics are per (B, L) batch."""
    squeeze = x.ndim == 2
    if squeeze:
        x = x[None]
    G, B, L = x.shape
    Hp = w1_p.shape[1]

    def full(a):
        return pl.BlockSpec(a.shape, lambda g: (0,) * a.ndim)

    out = pl.pallas_call(
        predictor_kernel,
        out_shape=jax.ShapeDtypeStruct((G, B, L), jnp.float32),
        grid=(G,),
        in_specs=[
            pl.BlockSpec((None, B, L), lambda g: (g, 0, 0)),   # per-batch block
            full(w1_p), full(gb_p), full(w2_p),                # weights resident
        ],
        out_specs=pl.BlockSpec((None, B, L), lambda g: (g, 0, 0)),
        compiler_params=pltpu.CompilerParams(
            dimension_semantics=("parallel",),                 # v7x: split G across TCs
            vmem_limit_bytes=_vmem_budget(B, L, Hp),
        ),
    )(x, w1_p, gb_p, w2_p)

    return out[0] if squeeze else out


def reference_forward(x, w1, b1, gamma, beta, w2, b2):
    h = x @ w1 + b1
    mean = jnp.mean(h, axis=0, keepdims=True)
    var = jnp.mean((h - mean) ** 2, axis=0, keepdims=True)
    h = (h - mean) / jnp.sqrt(var + 1e-5)
    h = h * gamma + beta
    h = jnp.where(h >= 0, h, 0.2 * h)
    return h @ w2 + b2


if __name__ == "__main__":
    latent_size = 32
    hidden = 100
    batch = 8
    groups = 3  # independent batches processed in one gridded call

    key = jax.random.PRNGKey(0)
    kx, k1, k2, k3, k4, k5, k6 = jax.random.split(key, 7)

    # Deterministic synthetic parameters (PyTorch-style uniform fan-in init);
    # gamma/beta randomized around (1, 0) to exercise the BN affine path.
    bound1 = 1.0 / jnp.sqrt(latent_size)
    w1 = jax.random.uniform(k1, (latent_size, hidden), jnp.float32, -bound1, bound1)
    b1 = jax.random.uniform(k2, (1, hidden), jnp.float32, -bound1, bound1)

    gamma = 1.0 + 0.1 * jax.random.normal(k5, (1, hidden), jnp.float32)
    beta = 0.1 * jax.random.normal(k6, (1, hidden), jnp.float32)

    bound2 = 1.0 / jnp.sqrt(hidden)
    w2 = jax.random.uniform(k3, (hidden, latent_size), jnp.float32, -bound2, bound2)
    b2 = jax.random.uniform(k4, (1, latent_size), jnp.float32, -bound2, bound2)

    x = jax.random.normal(kx, (groups, batch, latent_size), jnp.float32)

    # One-time setup: padding hoisted out of the per-call path.
    w1_p, gb_p, w2_p = prepare_params(w1, b1, gamma, beta, w2, b2)

    # Gridded call: 3 independent batches, per-batch BN statistics.
    out = jax.block_until_ready(predictor_forward(x, w1_p, gb_p, w2_p))
    ref = jax.vmap(
        lambda xb: reference_forward(xb, w1, b1, gamma, beta, w2, b2))(x)
    assert out.shape == (groups, batch, latent_size)
    assert jnp.allclose(out, ref, atol=1e-4, rtol=1e-4), \
        f"max abs err {jnp.max(jnp.abs(out - ref))}"

    # Plain (B, L) path, matching the original module's single-batch usage.
    out2 = jax.block_until_ready(predictor_forward(x[0], w1_p, gb_p, w2_p))
    ref2 = reference_forward(x[0], w1, b1, gamma, beta, w2, b2)
    assert out2.shape == (batch, latent_size)
    assert jnp.allclose(out2, ref2, atol=1e-4, rtol=1e-4), \
        f"max abs err {jnp.max(jnp.abs(out2 - ref2))}"

    # NOTE: the PyTorch docstring's "return a detached tensor" is an autograd
    # concept; in JAX apply jax.lax.stop_gradient at the call site if needed.
    print("KERNEL_OK")
</pallas_src>

<mosaic_0001>
module attributes {stable_mosaic.version = 11 : i64} {
  func.func @predictor_kernel(%arg0: i32, %arg1: memref<1x8x32xf32, #tpu.memory_space<vmem>>, %arg2: memref<32x128xf32, #tpu.memory_space<vmem>>, %arg3: memref<2x128xf32, #tpu.memory_space<vmem>>, %arg4: memref<128x32xf32, #tpu.memory_space<vmem>>, %arg5: memref<1x8x32xf32, #tpu.memory_space<vmem>>) attributes {dimension_semantics = [#tpu.dimension_semantics<parallel>], iteration_bounds = array<i64: 3>, scalar_prefetch = 0 : i64, scratch_operands = 0 : i64, tpu.core_type = #tpu.core_type<tc>, window_params = [{transform_indices = @transform_0, window_bounds = array<i64: 1, 8, 32>}, {pipeline_mode = #tpu.pipeline_mode<synchronous>, transform_indices = @transform_1, window_bounds = array<i64: 32, 128>}, {pipeline_mode = #tpu.pipeline_mode<synchronous>, transform_indices = @transform_2, window_bounds = array<i64: 2, 128>}, {pipeline_mode = #tpu.pipeline_mode<synchronous>, transform_indices = @transform_3, window_bounds = array<i64: 128, 32>}, {transform_indices = @transform_4, window_bounds = array<i64: 1, 8, 32>}]} {
    %c0 = arith.constant 0 : index
    %c0_0 = arith.constant 0 : index
    %c0_1 = arith.constant 0 : index
    %0 = vector.load %arg1[%c0, %c0_0, %c0_1] : memref<1x8x32xf32, #tpu.memory_space<vmem>>, vector<1x8x32xf32>
    %1 = vector.shape_cast %0 : vector<1x8x32xf32> to vector<8x32xf32>
    %c0_2 = arith.constant 0 : index
    %c0_3 = arith.constant 0 : index
    %2 = vector.load %arg2[%c0_2, %c0_3] : memref<32x128xf32, #tpu.memory_space<vmem>>, vector<32x128xf32>
    %cst = arith.constant dense<0.000000e+00> : vector<8x128xf32>
    %3 = tpu.matmul %1, %2, %cst {dimension_numbers = #tpu.dot_dimension_numbers<[1], [0], [0], [1], [0, 0, 1, 1], [], []>} : vector<8x32xf32>, vector<32x128xf32>, vector<8x128xf32> -> vector<8x128xf32>
    %cst_4 = arith.constant dense<0.000000e+00> : vector<128xf32>
    %4 = vector.multi_reduction <add>, %3, %cst_4 [0] : vector<8x128xf32> to vector<128xf32>
    %5 = vector.shape_cast %4 : vector<128xf32> to vector<1x128xf32>
    %cst_5 = arith.constant 8.000000e+00 : f32
    %6 = vector.broadcast %cst_5 : f32 to vector<1x128xf32>
    %7 = arith.divf %5, %6 : vector<1x128xf32>
    %8 = arith.mulf %3, %3 : vector<8x128xf32>
    %cst_6 = arith.constant dense<0.000000e+00> : vector<128xf32>
    %9 = vector.multi_reduction <add>, %8, %cst_6 [0] : vector<8x128xf32> to vector<128xf32>
    %10 = vector.shape_cast %9 : vector<128xf32> to vector<1x128xf32>
    %cst_7 = arith.constant 8.000000e+00 : f32
    %11 = vector.broadcast %cst_7 : f32 to vector<1x128xf32>
    %12 = arith.divf %10, %11 : vector<1x128xf32>
    %13 = arith.mulf %7, %7 : vector<1x128xf32>
    %14 = arith.subf %12, %13 : vector<1x128xf32>
    %cst_8 = arith.constant 0.000000e+00 : f32
    %15 = vector.broadcast %cst_8 : f32 to vector<1x128xf32>
    %16 = arith.maximumf %14, %15 : vector<1x128xf32>
    %c0_9 = arith.constant 0 : index
    %c0_10 = arith.constant 0 : index
    %17 = vector.load %arg3[%c0_9, %c0_10] : memref<2x128xf32, #tpu.memory_space<vmem>>, vector<2x128xf32>
    %18 = vector.extract_strided_slice %17 {offsets = [0, 0], sizes = [1, 128], strides = [1, 1]} : vector<2x128xf32> to vector<1x128xf32>
    %cst_11 = arith.constant 9.99999974E-6 : f32
    %19 = vector.broadcast %cst_11 : f32 to vector<1x128xf32>
    %20 = arith.addf %16, %19 : vector<1x128xf32>
    %21 = math.rsqrt %20 : vector<1x128xf32>
    %22 = arith.mulf %18, %21 : vector<1x128xf32>
    %23 = vector.extract_strided_slice %17 {offsets = [1, 0], sizes = [1, 128], strides = [1, 1]} : vector<2x128xf32> to vector<1x128xf32>
    %24 = arith.mulf %7, %22 : vector<1x128xf32>
    %25 = arith.subf %23, %24 : vector<1x128xf32>
    %26 = vector.broadcast %22 : vector<1x128xf32> to vector<8x128xf32>
    %27 = arith.mulf %3, %26 : vector<8x128xf32>
    %28 = vector.broadcast %25 : vector<1x128xf32> to vector<8x128xf32>
    %29 = arith.addf %27, %28 : vector<8x128xf32>
    %cst_12 = arith.constant 2.000000e-01 : f32
    %30 = vector.broadcast %cst_12 : f32 to vector<8x128xf32>
    %31 = arith.mulf %30, %29 : vector<8x128xf32>
    %32 = arith.maximumf %29, %31 : vector<8x128xf32>
    %c0_13 = arith.constant 0 : index
    %c0_14 = arith.constant 0 : index
    %33 = vector.load %arg4[%c0_13, %c0_14] : memref<128x32xf32, #tpu.memory_space<vmem>>, vector<128x32xf32>
    %cst_15 = arith.constant dense<0.000000e+00> : vector<8x32xf32>
    %34 = tpu.matmul %32, %33, %cst_15 {dimension_numbers = #tpu.dot_dimension_numbers<[1], [0], [0], [1], [0, 0, 1, 1], [], []>} : vector<8x128xf32>, vector<128x32xf32>, vector<8x32xf32> -> vector<8x32xf32>
    %c0_16 = arith.constant 0 : index
    %c0_17 = arith.constant 0 : index
    %c0_18 = arith.constant 0 : index
    %35 = vector.load %arg5[%c0_16, %c0_17, %c0_18] : memref<1x8x32xf32, #tpu.memory_space<vmem>>, vector<1x8x32xf32>
    %36 = vector.shape_cast %35 : vector<1x8x32xf32> to vector<8x32xf32>
    %37 = vector.shape_cast %34 : vector<8x32xf32> to vector<1x8x32xf32>
    tpu.vector_store %arg5[%c0_16, %c0_17, %c0_18], %37 {strides = array<i32>} : memref<1x8x32xf32, #tpu.memory_space<vmem>>, vector<1x8x32xf32>,
    return
  }
  func.func @transform_0(%arg0: i32) -> (i32, i32, i32) {
    %c0_i32 = arith.constant 0 : i32
    %c0_i32_0 = arith.constant 0 : i32
    %c0_i32_1 = arith.constant 0 : i32
    return %arg0, %c0_i32, %c0_i32_0 : i32, i32, i32
  }
  func.func @transform_1(%arg0: i32) -> (i32, i32) {
    %c0_i32 = arith.constant 0 : i32
    %c0_i32_0 = arith.constant 0 : i32
    %c0_i32_1 = arith.constant 0 : i32
    return %c0_i32, %c0_i32_0 : i32, i32
  }
  func.func @transform_2(%arg0: i32) -> (i32, i32) {
    %c0_i32 = arith.constant 0 : i32
    %c0_i32_0 = arith.constant 0 : i32
    %c0_i32_1 = arith.constant 0 : i32
    return %c0_i32, %c0_i32_0 : i32, i32
  }
  func.func @transform_3(%arg0: i32) -> (i32, i32) {
    %c0_i32 = arith.constant 0 : i32
    %c0_i32_0 = arith.constant 0 : i32
    %c0_i32_1 = arith.constant 0 : i32
    return %c0_i32, %c0_i32_0 : i32, i32
  }
  func.func @transform_4(%arg0: i32) -> (i32, i32, i32) {
    %c0_i32 = arith.constant 0 : i32
    %c0_i32_0 = arith.constant 0 : i32
    %c0_i32_1 = arith.constant 0 : i32
    return %arg0, %c0_i32, %c0_i32_0 : i32, i32, i32
  }
}

</mosaic_0001>

<bundles_post_ra>
// kernel: predictor_forward.1
= control target key start
LH: loop header
LB: loop body
LE: loop exit
PB: predicated region body
PF: predicated region fallthrough
CT: control target
= control target key end

     0   :  { %9 = vsyncpa [#allocation3], 0  ;;  %s870_s0 = inlined_call_operand.vmem [shape: f32[3,8,32], index: 0, kind: input, shape index: {}]   ;;  %s871_s1 = inlined_call_operand.vmem [shape: f32[32,128], index: 1, kind: input, shape index: {}]   ;;  %s872_s2 = inlined_call_operand.vmem [shape: f32[2,128], index: 2, kind: input, shape index: {}]   ;;  %s873_s3 = inlined_call_operand.vmem [shape: f32[128,32], index: 3, kind: input, shape index: {}]   ;;  %s874_s4 = inlined_call_operand.hbm [shape: f32[3,8,32], index: 4, kind: output, shape index: {}]  }
   0x1   :  { %11 = vsyncpa [#allocation3 + $0x1], 0  ;;  %s684_s15 = smov 0   ;;  %s686_s16 = smov 0  }
   0x2   :  { %s688_s17 = smov 0   ;;  %s690_s18 = smov 0  }
   0x3 LB: > { %s705_s19 = sadd.s32 4294967295, %s654_s18   ;;  %s472_s20 = sadd.s32 4294967294, %s654_s18   ;;  %s654_s18 = sphi %s690_s18, %s880_s18   ;;  %s650_s17 = sphi %s688_s17, %s879_s17   ;;  %s646_s16 = sphi %s686_s16, %s878_s16   ;;  %s642_s15 = sphi %s684_s15, %s877_s15  }
   0x4   : > { %s709_s21 = sadd.s32 1, %s654_s18   ;;  %s113_s22 = sadd.s32 1, %s650_s17 }
   0x5   : > { %s110_s23 = ssub.s32 %s654_s18, %s709_s21  ;;  %p123_p0 = scmp.ne.s32.totalorder %s650_s17, %s646_s16 }
   0x6   : > { %p111_p1 = scmp.eq.s32.totalorder %s110_s23, 0  ;;  %p124_p2 = scmp.eq.s32.totalorder %s705_s19, 2 }
   0x7   : > { %p129_p3 = scmp.ne.s32.totalorder %s646_s16, %s642_s15  ;;  %p130_p4 = scmp.eq.s32.totalorder %s472_s20, 2 }
   0x8   : > { %s720_s24 = scalar_select %p111_p1, %s650_s17, %s113_s22  }
   0x9   : > { %p722_p5 = por %p124_p2, %p123_p0  ;;  %p726_p6 = por %p130_p4, %p129_p3 }
   0xa   : > { %p475_p7 = scmp.ge.s32.totalorder %s654_s18, 1  ;;  %p164_p8 = scmp.lt.s32.totalorder %s654_s18, 4 }
   0xc   : > { %p165_p9 = pnand %p475_p7, %p164_p8 }
   0xd   : > { %p189_p10 = scmp.lt.s32.totalorder (!%p165_p9), %s705_s19, 2  ;;  %s186_s14 = sand.u32 (!%p165_p9), 1, %s646_s16  }
   0xe   : > { %168 = sbr.rel (%p165_p9) target bundleno = 480 (0x1e0), region = 36  ;;  %s476_s20 = sshll.u32 (!%p165_p9), %s186_s14, 3 }
   0xf   : > { %s480_s22 = sshll.u32 (!%p165_p9), %s705_s19, 7  ;;  %s188_s23 = scalar_lea.vmem (!%p165_p9), [#allocation2], %s476_s20 }
  0x10   : > { %s413_s27 = sshll.u32 (!%p165_p9), %s188_s23, 4  ;;  %s828_s30 = scalar_lea.hbm (!%p165_p9), %s874_s4, %s480_s22  ;;  %s830_s27 = int_to_ptr.vmem [resolvable:$true] %s413_s27 }
  0x11   : > { %s594_s6 = scalar_lea.vmem (!%p165_p9), %s830_s27, 128 }
  0x12   : > { %p595_p11 = scmp.ne.s32.totalorder (!%p165_p9), %s830_s27, %s594_s6 }
  0x13   : > { %v197_v0 = vld [vmem:[%s871_s1 + $0x18] sm:$0xff]  ;;  %v656_v1 = vmov 0.0   ;;  %v196_v2 = vld [vmem:[%s871_s1 + $0x10] sm:$0xff]  ;;  %vm657_vm0 = vmmov 0   ;;  %s190_s5 = scalar_select %p189_p10, %s705_s19, 2  ;;  %v195_v3 = vld [vmem:[%s871_s1 + $0x8] sm:$0xff]  ;;  %v300_v43 = vlaneseq }
  0x14   : > { %505 = vmatprep.subr.mxu0 %v656_v1  ;;  %513 = vmatprep.mubr.msk.f32.mxu0 %vm657_vm0, %v656_v1  ;;  %v194_v4 = vld [vmem:[%s871_s1] sm:$0xff]  ;;  %vm198_vm1 = vcmask 261120   ;;  %v327_v6 = vld [vmem:[%s873_s3 + $0x78] sm:$0xff]  ;;  %v326_v7 = vld [vmem:[%s873_s3 + $0x70] sm:$0xff]  ;;  %p596_p12 = pnand %p595_p11, %p722_p5  ;;  %s658_s19 = smov [#allocation2]  }
  0x15   : > { %506 = vmatpush3.msra.mxu0 %v197_v0  ;;  %516 = vmatprep.subr.mxu1 %v656_v1  ;;  %s477_s8 = sshll.u32 %s190_s5, 3  ;;  %v325_v8 = vld [vmem:[%s873_s3 + $0x68] sm:$0xff]  ;;  %v324_v9 = vld [vmem:[%s873_s3 + $0x60] sm:$0xff]  ;;  %v323_v10 = vld [vmem:[%s873_s3 + $0x58] sm:$0xff]  ;;  %v301_v44 = vshrl.u32 %v300_v43, 7  ;;  %s400_s5 = scalar_lea.sflag [#allocation3], %s186_s14 }
  0x16   : > { %507 = vmatprep.subr.mxu0 %v656_v1  ;;  %548 = vmatprep.mubr.msk.f32.mxu1 %vm657_vm0, %v656_v1  ;;  %s192_s13 = scalar_lea.vmem %s870_s0, %s477_s8  ;;  %v322_v11 = vld [vmem:[%s873_s3 + $0x50] sm:$0xff]  ;;  %v321_v12 = vld [vmem:[%s873_s3 + $0x48] sm:$0xff]  ;;  %v320_v13 = vld [vmem:[%s873_s3 + $0x40] sm:$0xff]  ;;  %p597_p13 = pneg %p596_p12 }
  0x17   : > { %508 = vmatpush3.msra.mxu0 %v196_v2  ;;  %v193_v5 = vld [vmem:[%s192_s13] sm:$0xff]  ;;  %517 = vmatpush3.msra.mxu1 %v327_v6  ;;  %v319_v14 = vld [vmem:[%s873_s3 + $0x38] sm:$0xff]  ;;  %v318_v15 = vld [vmem:[%s873_s3 + $0x30] sm:$0xff]  ;;  %v302_v48 = vsub.s32 0, %v301_v44  ;;  %v307_v52 = vsub.s32 1, %v301_v44  ;;  %s598_s7 = sshll.u32 %s658_s19, 4  ;;  %s599_s7 = int_to_ptr.vmem [resolvable:$false] %s598_s7 }
  0x18   : > { %509 = vmatprep.subr.mxu0 %v656_v1  ;;  %518 = vmatprep.subr.mxu1 %v656_v1  ;;  %v317_v16 = vld [vmem:[%s873_s3 + $0x28] sm:$0xff]  ;;  %v316_v17 = vld [vmem:[%s873_s3 + $0x20] sm:$0xff]  ;;  %v315_v18 = vld [vmem:[%s873_s3 + $0x18] sm:$0xff]  ;;  %s600_s8 = scalar_lea.vmem %s599_s7, 256  ;;  %p601_p0 = scmp.lt.s32.totalorder %s830_s27, %s599_s7 }
  0x19   : > { %510 = vmatpush3.msra.mxu0 %v195_v3  ;;  %519 = vmatpush3.msra.mxu1 %v326_v7  ;;  %v314_v19 = vld [vmem:[%s873_s3 + $0x10] sm:$0xff]  ;;  %v313_v20 = vld [vmem:[%s873_s3 + $0x8] sm:$0xff]  ;;  %v312_v21 = vld [vmem:[%s873_s3] sm:$0xff]  ;;  %p602_p1 = scmp.lt.s32.totalorder %s600_s8, %s594_s6 }
  0x1a   : > { %511 = vmatprep.subr.mxu0 %v656_v1  ;;  %520 = vmatprep.subr.mxu1 %v656_v1  ;;  %v291_v45 = vld [vmem:[%s872_s2] sm:$0x3] }
  0x1b   : > { %512 = vmatpush3.msra.mxu0 %v194_v4  ;;  %521 = vmatpush3.msra.mxu1 %v325_v8  ;;  %p603_p2 = por %p602_p1, %p601_p0 }
  0x1c   : > { %514 = vmatmul.mubr.msk.f32.vlgmr.msra.gmra.mxu0 %vm198_vm1, %v193_v5  ;;  %522 = vmatprep.subr.mxu1 %v656_v1 }
  0x1d   : > { %523 = vmatpush3.msra.mxu1 %v324_v9  ;;  %p604_p3 = pnand %p603_p2, %p597_p13 }
  0x1e   : > { %524 = vmatprep.subr.mxu1 %v656_v1 }
  0x1f   : > { %525 = vmatpush3.msra.mxu1 %v323_v10 }
  0x20   : > { %526 = vmatprep.subr.mxu1 %v656_v1 }
  0x21   : > { %527 = vmatpush3.msra.mxu1 %v322_v11 }
  0x22   : > { %528 = vmatprep.subr.mxu1 %v656_v1 }
  0x23   : > { %529 = vmatpush3.msra.mxu1 %v321_v12 }
  0x24   : > { %530 = vmatprep.subr.mxu1 %v656_v1 }
  0x25   : > { %531 = vmatpush3.msra.mxu1 %v320_v13 }
  0x26   : > { %532 = vmatprep.subr.mxu1 %v656_v1 }
  0x27   : > { %533 = vmatpush3.msra.mxu1 %v319_v14 }
  0x28   : > { %534 = vmatprep.subr.mxu1 %v656_v1 }
  0x29   : > { %535 = vmatpush3.msra.mxu1 %v318_v15 }
  0x2a   : > { %536 = vmatprep.subr.mxu1 %v656_v1 }
  0x2b   : > { %537 = vmatpush3.msra.mxu1 %v317_v16 }
  0x2c   : > { %538 = vmatprep.subr.mxu1 %v656_v1 }
  0x2d   : > { %539 = vmatpush3.msra.mxu1 %v316_v17 }
  0x2e   : > { %540 = vmatprep.subr.mxu1 %v656_v1 }
  0x2f   : > { %541 = vmatpush3.msra.mxu1 %v315_v18 }
  0x30   : > { %542 = vmatprep.subr.mxu1 %v656_v1 }
  0x31   : > { %543 = vmatpush3.msra.mxu1 %v314_v19 }
  0x32   : > { %544 = vmatprep.subr.mxu1 %v656_v1 }
  0x33   : > { %545 = vmatpush3.msra.mxu1 %v313_v20 }
  0x34   : > { %546 = vmatprep.subr.mxu1 %v656_v1 }
  0x35   : > { %547 = vmatpush3.msra.mxu1 %v312_v21 }
  0xdc   : > { %v268_v22 = vpop.f32.mrf.mxu0 }
  0xdd   : > { %v272_v23 = vrot.slane %v268_v22, 4  ;;  %v280_v24 = vmul.f32 %v268_v22, %v268_v22 }
  0xde   : > { %v515_v25 = vpop.f32.mrf.mxu0 }
  0xdf   : > { %v273_v26 = vadd.f32 %v272_v23, %v268_v22  ;;  %v281_v27 = vrot.slane %v280_v24, 4 }
  0xe1   : > { %v274_v28 = vrot.slane %v273_v26, 2  ;;  %v282_v29 = vadd.f32 %v281_v27, %v280_v24 }
  0xe3   : > { %v275_v30 = vadd.f32 %v274_v28, %v273_v26  ;;  %v283_v31 = vrot.slane %v282_v29, 2 }
  0xe5   : > { %v276_v32 = vrot.slane %v275_v30, 1  ;;  %v284_v33 = vadd.f32 %v283_v31, %v282_v29 }
  0xe7   : > { %v277_v34 = vadd.f32 %v276_v32, %v275_v30  ;;  %v285_v35 = vrot.slane %v284_v33, 1 }
  0xe9   : > { %v279_v36 = vmul.f32 0.125, %v277_v34  ;;  %v286_v37 = vadd.f32 %v285_v35, %v284_v33 }
  0xeb   : > { %v287_v38 = vmul.f32 0.125, %v286_v37  ;;  %v288_v39 = vmul.f32 %v279_v36, %v279_v36 }
  0xed   : > { %v289_v40 = vsub.f32 %v287_v38, %v288_v39 }
  0xef   : > { %v290_v41 = vmax.f32 %v289_v40, 0.0 }
  0xf1   : > { %v292_v42 = vadd.f32 1e-05, %v290_v41 }
  0xf3   : > { %592 = vrsqrt.f32 %v292_v42 }
 0x100   : > { %v593_v46 = vpop.eup %592 }
 0x101   : > { %v294_v47 = vmul.f32 %v593_v46, %v291_v45 }
 0x103   : > { %v295_v49 = vmul.f32 %v294_v47, %v279_v36  ;;  %v303_v50 = vrot.slane %v294_v47, %v302_v48 }
 0x105   : > { %v297_v51 = vrot.slane %v295_v49, 7  ;;  %v304_v54 = vmul.f32 %v303_v50, %v268_v22 }
 0x107   : > { %v299_v53 = vsub.f32 %v291_v45, %v297_v51 }
 0x109   : > { %v308_v55 = vrot.slane %v299_v53, %v307_v52 }
 0x10b   : > { %v309_v56 = vadd.f32 %v308_v55, %v304_v54 }
 0x10d   : > { %v310_v57 = vmul.f32 0.2, %v309_v56 }
 0x10f   : > { %v311_v58 = vmax.f32 %v309_v56, %v310_v57 }
 0x111   : > { %549 = vmatmul.mubr.f32.vlgmr.msra.gmra.mxu1 %v311_v58 }
 0x1d1   : > { %v394_v59 = vpop.f32.mrf.mxu1 }
 0x1d2   : > { %398 = vst.msk [vmem:[%s188_s23] sm:$0xff] %vm198_vm1, %v394_v59 }
 0x1d3   : > { %v550_v60 = vpop.f32.mrf.mxu1 }
 0x1d4   : > { %607 = shalt.err (!%p604_p3)
}
 0x1d5   : > { %s608_s9 = scalar_lea.hbm %s828_s30, 128  ;;  %s612_s12 = scalar_lea.hbm %s874_s4, 384 }
 0x1d6   : > { %p609_p4 = scmp.ne.s32.totalorder %s828_s30, %s608_s9  ;;  %p613_p9 = scmp.lt.s32.totalorder %s828_s30, %s874_s4 }
 0x1d7   : > { %p614_p10 = scmp.lt.s32.totalorder %s612_s12, %s608_s9 }
 0x1d8   : > { %p610_p7 = pnand %p609_p4, %p722_p5 }
 0x1d9   : > { %p615_p11 = por %p614_p10, %p613_p9 }
 0x1da   : > { %p611_p8 = pneg %p610_p7 }
 0x1dc   : > { %p616_p12 = pnand %p615_p11, %p611_p8 }
 0x1de   : > { %619 = shalt.err (!%p616_p12)
}
 0x1df   : > { %551 = dma.vmem_to_hbm [thread:$0]  (%p722_p5), %s830_s27, 128, %s828_s30, %s400_s5  }
 0x1e0 PF: > { %p557_p13 = scmp.ge.s32.totalorder %s654_s18, 2  ;;  %s425_s20 = sand.u32 1, %s642_s15  }
 0x1e1   : > { %s426_s22 = scalar_lea.sflag [#allocation3], %s425_s20 }
 0x1e2   : > { %p554_p0 = pnand %p557_p13, %p726_p6 }
 0x1e4   : > { %p555_p1 = pneg %p554_p0 }
 0x1e6   : > { %637 = dma.done.wait (%p555_p1), %s426_s22, 128  }
 0x1e7   : > { %639 = vsyncadd (%p555_p1), %s426_s22, 4294967168  ;;  %p14_p2 = scmp.ge.s32.totalorder %s709_s21, 5   ;;  %s877_s15 = smov %s646_s16 }
 0x1e8   : > { %s878_s16 = smov %s650_s17  ;;  %s879_s17 = smov %s720_s24 }
 0x1e9   : > { %s880_s18 = smov %s709_s21  ;;  %16 = sbr.rel (!%p14_p2) target bundleno = 3 (0x3), region = 71 }
 0x1ee   :  { %431 = vsyncpa [#allocation3], 1 }
 0x1ef   :  { %433 = vsyncpa [#allocation3 + $0x1], 1 }

</bundles_post_ra>
